<compile_context>
chip_gen: v7x
topology: tpu7x:2x2x1
jax: 0.10.0
libtpu: 0.0.40
codegen_flags: <defaults>
</compile_context>

<pallas_src>
import jax
import jax.numpy as jnp
from jax.experimental import pallas as pl
from jax.experimental.pallas import tpu as pltpu


def msa_kernel(x_ref, w_qkv_ref, b_qkv_ref, w_out_ref, b_out_ref, o_ref, acc_ref):
    # Ref shapes (HG = head_block):
    #   x_ref     : (1, N, D)          compute dtype
    #   w_qkv_ref : (3, HG, D, dh)     compute dtype, scaling folded into q plane
    #   b_qkv_ref : (3, HG, 1, dh)     f32
    #   w_out_ref : (HG, dh, D)        compute dtype
    #   b_out_ref : (1, D)             f32
    #   o_ref     : (1, N, D)
    #   acc_ref   : (N, D)             f32 scratch, resident across the head grid axis
    g = pl.program_id(1)
    HG = w_qkv_ref.shape[1]
    N = x_ref.shape[1]
    D = x_ref.shape[2]

    @pl.when(g == 0)
    def _():
        acc_ref[...] = jnp.zeros_like(acc_ref)

    x = x_ref[0]                                   # (N, D) compute dtype
    cdtype = x.dtype
    # Hoisted once per grid step (not inside any loop); only HG copies of x.
    xb = jnp.broadcast_to(x[None], (HG, N, D))

    def project(t):
        # One batched matmul over the HG heads of this group; f32 accumulate + bias.
        r = jnp.einsum('hnd,hde->hne', xb, w_qkv_ref[t],
                       preferred_element_type=jnp.float32) + b_qkv_ref[t]
        return r.astype(cdtype)                    # (HG, N, dh)

    q = project(0)                                 # 1/sqrt(dh) already folded in
    k = project(1)
    v = project(2)

    # Attention scores — contraction over the last dims (no explicit transpose).
    s = jnp.einsum('hqd,hkd->hqk', q, k,
                   preferred_element_type=jnp.float32)          # (HG, N, N) f32

    # Numerically stable softmax in f32; reciprocal on the EUP (approx).
    m = jnp.max(s, axis=-1, keepdims=True)
    p = jnp.exp(s - m)
    att = (p * pl.reciprocal(jnp.sum(p, axis=-1, keepdims=True),
                             approx=True)).astype(cdtype)       # (HG, N, N)

    y = jnp.einsum('hqk,hkd->hqd', att, v,
                   preferred_element_type=jnp.float32).astype(cdtype)   # (HG, N, dh)

    # Output projection as per-head partial matmuls, reduced over heads into the
    # resident f32 accumulator (mathematically identical to concat(heads) @ W_out,
    # with no lane concatenation).
    proj = jnp.einsum('hnd,hde->hne', y, w_out_ref[...],
                      preferred_element_type=jnp.float32)       # (HG, N, D) f32
    acc_ref[...] += jnp.sum(proj, axis=0)

    @pl.when(g == pl.num_programs(1) - 1)
    def _():
        o_ref[0] = (acc_ref[...] + b_out_ref[...]).astype(o_ref.dtype)


def msa_forward(x, wqkv, bqkv, wout, bout, *, num_heads,
                compute_dtype=jnp.bfloat16, head_block=None):
    """MSA forward. wqkv: (D, 3D), bqkv: (3D,), wout: (D, D), bout: (D,)."""
    B, N, D = x.shape
    H = num_heads
    dh = D // H
    assert H * dh == D
    if head_block is None:
        head_block = H                       # toy/typical sizes: all heads in one step
    assert H % head_block == 0
    n_groups = H // head_block
    scaling = float(dh) ** (-0.5)
    f32 = jnp.float32

    # ---- wrapper-side weight re-layout: heads become a leading batch dim (free) ----
    # (D, 3D) -> (3, H, D, dh):  w_all[t, h, d, e] == wqkv[d, t*D + h*dh + e]
    w_all = wqkv.astype(f32).reshape(D, 3, H, dh).transpose(1, 2, 0, 3)
    b_all = bqkv.astype(f32).reshape(3, H, 1, dh)
    # Fold the attention scaling into the q projection (plane t == 0).
    scale = jnp.array([scaling, 1.0, 1.0], f32)[:, None, None, None]
    w_all = w_all * scale
    b_all = b_all * scale
    # (D, D) -> (H, dh, D): input rows grouped per head (matches head-major y layout).
    w_o = wout.astype(f32).reshape(H, dh, D)
    b_o = bout.astype(f32).reshape(1, D)

    # Matmul operands in compute_dtype (bf16 by default); biases & softmax stay f32.
    x_c = x.astype(compute_dtype)
    w_all_c = w_all.astype(compute_dtype)
    w_o_c = w_o.astype(compute_dtype)

    flops = (2 * B * N * D * 3 * D            # QKV projection
             + 2 * B * H * N * N * dh * 2     # q @ k^T and att @ v
             + 2 * B * N * D * D)             # output projection
    bytes_accessed = (x_c.size * x_c.dtype.itemsize
                      + w_all_c.size * w_all_c.dtype.itemsize
                      + w_o_c.size * w_o_c.dtype.itemsize
                      + (b_all.size + b_o.size) * 4
                      + B * N * D * x.dtype.itemsize)
    cost = pl.CostEstimate(flops=int(flops),
                           transcendentals=int(B * H * N * N),
                           bytes_accessed=int(bytes_accessed))

    HG = head_block
    # TODO(synk): for very long sequences also tile N (flash-style online softmax);
    # ViT sequence lengths fit VMEM comfortably so a single N block is used here.
    return pl.pallas_call(
        msa_kernel,
        out_shape=jax.ShapeDtypeStruct((B, N, D), x.dtype),
        grid_spec=pltpu.PrefetchScalarGridSpec(
            num_scalar_prefetch=0,
            grid=(B, n_groups),
            in_specs=[
                pl.BlockSpec((1, N, D), lambda b, g: (b, 0, 0)),          # x
                pl.BlockSpec((3, HG, D, dh), lambda b, g: (0, g, 0, 0)),  # W_qkv
                pl.BlockSpec((3, HG, 1, dh), lambda b, g: (0, g, 0, 0)),  # b_qkv
                pl.BlockSpec((HG, dh, D), lambda b, g: (g, 0, 0)),        # W_out
                pl.BlockSpec((1, D), lambda b, g: (0, 0)),                # b_out
            ],
            out_specs=pl.BlockSpec((1, N, D), lambda b, g: (b, 0, 0)),
            scratch_shapes=[pltpu.VMEM((N, D), jnp.float32)],             # head-reduction acc
        ),
        compiler_params=pltpu.CompilerParams(
            dimension_semantics=("parallel", "arbitrary"),
            vmem_limit_bytes=32 * 1024 * 1024),
        cost_estimate=cost,
    )(x_c, w_all_c, b_all, w_o_c, b_o)


def msa_reference(x, wqkv, bqkv, wout, bout, *, num_heads):
    # Pure-JAX reference mirroring the PyTorch forward exactly.
    B, N, D = x.shape
    dh = D // num_heads
    scaling = float(dh) ** (-0.5)
    qkv = jnp.einsum('bnd,de->bne', x, wqkv) + bqkv
    q, k, v = jnp.split(qkv, 3, axis=-1)
    q = q.reshape(B, N, num_heads, dh).transpose(0, 2, 1, 3)
    k = k.reshape(B, N, num_heads, dh).transpose(0, 2, 1, 3)
    v = v.reshape(B, N, num_heads, dh).transpose(0, 2, 1, 3)
    att = jax.nn.softmax(jnp.einsum('bhqd,bhkd->bhqk', q, k) * scaling, axis=-1)
    y = jnp.einsum('bhan,bhnd->bhad', att, v)
    y = y.transpose(0, 2, 1, 3).reshape(B, N, D)
    return jnp.einsum('bnd,de->bne', y, wout) + bout


if __name__ == "__main__":
    # Small shapes consistent with the module: batch=2, seq=8, dim=32, heads=4.
    B, N, D, H = 2, 8, 32, 4

    key = jax.random.PRNGKey(0)
    kx, kw1, kb1, kw2, kb2 = jax.random.split(key, 5)

    x = jax.random.normal(kx, (B, N, D), dtype=jnp.float32)
    wqkv = jax.random.normal(kw1, (D, 3 * D), dtype=jnp.float32) * 0.05
    bqkv = jax.random.normal(kb1, (3 * D,), dtype=jnp.float32) * 0.05
    wout = jax.random.normal(kw2, (D, D), dtype=jnp.float32) * 0.05
    bout = jax.random.normal(kb2, (D,), dtype=jnp.float32) * 0.05

    ref = msa_reference(x, wqkv, bqkv, wout, bout, num_heads=H)

    # f32 matmul path, all heads in one step — tight check (only approx reciprocal differs).
    out_f32 = jax.block_until_ready(
        msa_forward(x, wqkv, bqkv, wout, bout, num_heads=H,
                    compute_dtype=jnp.float32))
    assert out_f32.shape == (B, N, D)
    assert jnp.allclose(out_f32, ref, atol=5e-3, rtol=5e-3), \
        "f32 Pallas output mismatch vs reference"

    # f32 path with head tiling (head_block=2) — exercises the head-reduction accumulator.
    out_f32_hb = jax.block_until_ready(
        msa_forward(x, wqkv, bqkv, wout, bout, num_heads=H,
                    compute_dtype=jnp.float32, head_block=2))
    assert out_f32_hb.shape == (B, N, D)
    assert jnp.allclose(out_f32_hb, ref, atol=5e-3, rtol=5e-3), \
        "f32 head-tiled Pallas output mismatch vs reference"

    # bf16 matmul path (default; best on v6e/v7x MXU) — looser tolerance.
    out_bf16 = jax.block_until_ready(
        msa_forward(x, wqkv, bqkv, wout, bout, num_heads=H,
                    compute_dtype=jnp.bfloat16))
    assert out_bf16.shape == (B, N, D)
    assert jnp.allclose(out_bf16, ref, atol=3e-2, rtol=3e-2), \
        "bf16 Pallas output mismatch vs reference"

    print("KERNEL_OK")
</pallas_src>

<mosaic_0001>
module attributes {stable_mosaic.version = 11 : i64} {
  func.func @msa_kernel(%arg0: i32, %arg1: i32, %arg2: memref<1x8x32xf32, #tpu.memory_space<vmem>>, %arg3: memref<3x4x32x8xf32, #tpu.memory_space<vmem>>, %arg4: memref<3x4x1x8xf32, #tpu.memory_space<vmem>>, %arg5: memref<4x8x32xf32, #tpu.memory_space<vmem>>, %arg6: memref<1x32xf32, #tpu.memory_space<vmem>>, %arg7: memref<1x8x32xf32, #tpu.memory_space<vmem>>, %arg8: memref<8x32xf32, #tpu.memory_space<vmem>>) attributes {dimension_semantics = [#tpu.dimension_semantics<parallel>, #tpu.dimension_semantics<arbitrary>], iteration_bounds = array<i64: 2, 1>, scalar_prefetch = 0 : i64, scratch_operands = 1 : i64, tpu.core_type = #tpu.core_type<tc>, window_params = [{transform_indices = @transform_0, window_bounds = array<i64: 1, 8, 32>}, {transform_indices = @transform_1, window_bounds = array<i64: 3, 4, 32, 8>}, {transform_indices = @transform_2, window_bounds = array<i64: 3, 4, 1, 8>}, {transform_indices = @transform_3, window_bounds = array<i64: 4, 8, 32>}, {pipeline_mode = #tpu.pipeline_mode<synchronous>, transform_indices = @transform_4, window_bounds = array<i64: 1, 32>}, {transform_indices = @transform_5, window_bounds = array<i64: 1, 8, 32>}]} {
    %c0_i32 = arith.constant 0 : i32
    %0 = arith.cmpi eq, %arg1, %c0_i32 : i32
    %1 = arith.extui %0 : i1 to i32
    %c0_i32_0 = arith.constant 0 : i32
    %2 = arith.cmpi ne, %1, %c0_i32_0 : i32
    scf.if %2 {
      %cst_42 = arith.constant 0.000000e+00 : f32
      %50 = vector.broadcast %cst_42 : f32 to vector<8x32xf32>
      %c0_43 = arith.constant 0 : index
      %c0_44 = arith.constant 0 : index
      %51 = vector.load %arg8[%c0_43, %c0_44] : memref<8x32xf32, #tpu.memory_space<vmem>>, vector<8x32xf32>
      tpu.vector_store %arg8[%c0_43, %c0_44], %50 {strides = array<i32>} : memref<8x32xf32, #tpu.memory_space<vmem>>, vector<8x32xf32>,
    } else {
    }
    %c0 = arith.constant 0 : index
    %c0_1 = arith.constant 0 : index
    %c0_2 = arith.constant 0 : index
    %3 = vector.load %arg2[%c0, %c0_1, %c0_2] : memref<1x8x32xf32, #tpu.memory_space<vmem>>, vector<1x8x32xf32>
    %4 = vector.shape_cast %3 : vector<1x8x32xf32> to vector<8x32xf32>
    %5 = vector.shape_cast %4 : vector<8x32xf32> to vector<1x8x32xf32>
    %6 = vector.shape_cast %5 : vector<1x8x32xf32> to vector<1x8x32xf32>
    %7 = vector.broadcast %6 : vector<1x8x32xf32> to vector<4x8x32xf32>
    %c0_3 = arith.constant 0 : index
    %c0_4 = arith.constant 0 : index
    %c0_5 = arith.constant 0 : index
    %c0_6 = arith.constant 0 : index
    %8 = vector.load %arg3[%c0_3, %c0_4, %c0_5, %c0_6] : memref<3x4x32x8xf32, #tpu.memory_space<vmem>>, vector<1x4x32x8xf32>
    %9 = vector.shape_cast %8 : vector<1x4x32x8xf32> to vector<4x32x8xf32>
    "tpu.trace_start"() <{level = 10 : i32, message = "hnd,hde->hne"}> : () -> ()
    %cst = arith.constant dense<0.000000e+00> : vector<4x8x8xf32>
    %10 = tpu.matmul %7, %9, %cst {dimension_numbers = #tpu.dot_dimension_numbers<[2], [1], [1], [2], [0, 0, 0, 1, 1, 2], [0], [0]>} : vector<4x8x32xf32>, vector<4x32x8xf32>, vector<4x8x8xf32> -> vector<4x8x8xf32>
    "tpu.trace_stop"() : () -> ()
    %c0_7 = arith.constant 0 : index
    %c0_8 = arith.constant 0 : index
    %c0_9 = arith.constant 0 : index
    %c0_10 = arith.constant 0 : index
    %11 = vector.load %arg4[%c0_7, %c0_8, %c0_9, %c0_10] : memref<3x4x1x8xf32, #tpu.memory_space<vmem>>, vector<1x4x1x8xf32>
    %12 = vector.shape_cast %11 : vector<1x4x1x8xf32> to vector<4x1x8xf32>
    %13 = vector.broadcast %12 : vector<4x1x8xf32> to vector<4x8x8xf32>
    %14 = arith.addf %10, %13 : vector<4x8x8xf32>
    %c1 = arith.constant 1 : index
    %c0_11 = arith.constant 0 : index
    %c0_12 = arith.constant 0 : index
    %c0_13 = arith.constant 0 : index
    %15 = vector.load %arg3[%c1, %c0_11, %c0_12, %c0_13] : memref<3x4x32x8xf32, #tpu.memory_space<vmem>>, vector<1x4x32x8xf32>
    %16 = vector.shape_cast %15 : vector<1x4x32x8xf32> to vector<4x32x8xf32>
    "tpu.trace_start"() <{level = 10 : i32, message = "hnd,hde->hne"}> : () -> ()
    %cst_14 = arith.constant dense<0.000000e+00> : vector<4x8x8xf32>
    %17 = tpu.matmul %7, %16, %cst_14 {dimension_numbers = #tpu.dot_dimension_numbers<[2], [1], [1], [2], [0, 0, 0, 1, 1, 2], [0], [0]>} : vector<4x8x32xf32>, vector<4x32x8xf32>, vector<4x8x8xf32> -> vector<4x8x8xf32>
    "tpu.trace_stop"() : () -> ()
    %c1_15 = arith.constant 1 : index
    %c0_16 = arith.constant 0 : index
    %c0_17 = arith.constant 0 : index
    %c0_18 = arith.constant 0 : index
    %18 = vector.load %arg4[%c1_15, %c0_16, %c0_17, %c0_18] : memref<3x4x1x8xf32, #tpu.memory_space<vmem>>, vector<1x4x1x8xf32>
    %19 = vector.shape_cast %18 : vector<1x4x1x8xf32> to vector<4x1x8xf32>
    %20 = vector.broadcast %19 : vector<4x1x8xf32> to vector<4x8x8xf32>
    %21 = arith.addf %17, %20 : vector<4x8x8xf32>
    %c2 = arith.constant 2 : index
    %c0_19 = arith.constant 0 : index
    %c0_20 = arith.constant 0 : index
    %c0_21 = arith.constant 0 : index
    %22 = vector.load %arg3[%c2, %c0_19, %c0_20, %c0_21] : memref<3x4x32x8xf32, #tpu.memory_space<vmem>>, vector<1x4x32x8xf32>
    %23 = vector.shape_cast %22 : vector<1x4x32x8xf32> to vector<4x32x8xf32>
    "tpu.trace_start"() <{level = 10 : i32, message = "hnd,hde->hne"}> : () -> ()
    %cst_22 = arith.constant dense<0.000000e+00> : vector<4x8x8xf32>
    %24 = tpu.matmul %7, %23, %cst_22 {dimension_numbers = #tpu.dot_dimension_numbers<[2], [1], [1], [2], [0, 0, 0, 1, 1, 2], [0], [0]>} : vector<4x8x32xf32>, vector<4x32x8xf32>, vector<4x8x8xf32> -> vector<4x8x8xf32>
    "tpu.trace_stop"() : () -> ()
    %c2_23 = arith.constant 2 : index
    %c0_24 = arith.constant 0 : index
    %c0_25 = arith.constant 0 : index
    %c0_26 = arith.constant 0 : index
    %25 = vector.load %arg4[%c2_23, %c0_24, %c0_25, %c0_26] : memref<3x4x1x8xf32, #tpu.memory_space<vmem>>, vector<1x4x1x8xf32>
    %26 = vector.shape_cast %25 : vector<1x4x1x8xf32> to vector<4x1x8xf32>
    %27 = vector.broadcast %26 : vector<4x1x8xf32> to vector<4x8x8xf32>
    %28 = arith.addf %24, %27 : vector<4x8x8xf32>
    "tpu.trace_start"() <{level = 10 : i32, message = "hqd,hkd->hqk"}> : () -> ()
    %cst_27 = arith.constant dense<0.000000e+00> : vector<4x8x8xf32>
    %29 = tpu.matmul %14, %21, %cst_27 {dimension_numbers = #tpu.dot_dimension_numbers<[2], [2], [1], [1], [0, 0, 0, 1, 1, 1], [0], [0]>} : vector<4x8x8xf32>, vector<4x8x8xf32>, vector<4x8x8xf32> -> vector<4x8x8xf32>
    "tpu.trace_stop"() : () -> ()
    %cst_28 = arith.constant dense<0xFF800000> : vector<4x8xf32>
    %30 = vector.multi_reduction <maximumf>, %29, %cst_28 [2] : vector<4x8x8xf32> to vector<4x8xf32>
    %31 = vector.shape_cast %30 : vector<4x8xf32> to vector<4x8x1xf32>
    %32 = vector.broadcast %31 : vector<4x8x1xf32> to vector<4x8x8xf32>
    %33 = arith.subf %29, %32 : vector<4x8x8xf32>
    %34 = math.exp %33 : vector<4x8x8xf32>
    %cst_29 = arith.constant dense<0.000000e+00> : vector<4x8xf32>
    %35 = vector.multi_reduction <add>, %34, %cst_29 [2] : vector<4x8x8xf32> to vector<4x8xf32>
    %36 = vector.shape_cast %35 : vector<4x8xf32> to vector<4x8x1xf32>
    %37 = tpu.reciprocal %36 {approx = true} : vector<4x8x1xf32> -> vector<4x8x1xf32>
    %38 = vector.broadcast %37 : vector<4x8x1xf32> to vector<4x8x8xf32>
    %39 = arith.mulf %34, %38 : vector<4x8x8xf32>
    "tpu.trace_start"() <{level = 10 : i32, message = "hqk,hkd->hqd"}> : () -> ()
    %cst_30 = arith.constant dense<0.000000e+00> : vector<4x8x8xf32>
    %40 = tpu.matmul %39, %28, %cst_30 {dimension_numbers = #tpu.dot_dimension_numbers<[2], [1], [1], [2], [0, 0, 0, 1, 1, 2], [0], [0]>} : vector<4x8x8xf32>, vector<4x8x8xf32>, vector<4x8x8xf32> -> vector<4x8x8xf32>
    "tpu.trace_stop"() : () -> ()
    %c0_31 = arith.constant 0 : index
    %c0_32 = arith.constant 0 : index
    %c0_33 = arith.constant 0 : index
    %41 = vector.load %arg5[%c0_31, %c0_32, %c0_33] : memref<4x8x32xf32, #tpu.memory_space<vmem>>, vector<4x8x32xf32>
    "tpu.trace_start"() <{level = 10 : i32, message = "hnd,hde->hne"}> : () -> ()
    %cst_34 = arith.constant dense<0.000000e+00> : vector<4x8x32xf32>
    %42 = tpu.matmul %40, %41, %cst_34 {dimension_numbers = #tpu.dot_dimension_numbers<[2], [1], [1], [2], [0, 0, 0, 1, 1, 2], [0], [0]>} : vector<4x8x8xf32>, vector<4x8x32xf32>, vector<4x8x32xf32> -> vector<4x8x32xf32>
    "tpu.trace_stop"() : () -> ()
    %c0_35 = arith.constant 0 : index
    %c0_36 = arith.constant 0 : index
    %43 = vector.load %arg8[%c0_35, %c0_36] : memref<8x32xf32, #tpu.memory_space<vmem>>, vector<8x32xf32>
    %cst_37 = arith.constant dense<0.000000e+00> : vector<8x32xf32>
    %44 = vector.multi_reduction <add>, %42, %cst_37 [0] : vector<4x8x32xf32> to vector<8x32xf32>
    %45 = arith.addf %43, %44 : vector<8x32xf32>
    %c0_38 = arith.constant 0 : index
    %c0_39 = arith.constant 0 : index
    %46 = vector.load %arg8[%c0_38, %c0_39] : memref<8x32xf32, #tpu.memory_space<vmem>>, vector<8x32xf32>
    tpu.vector_store %arg8[%c0_38, %c0_39], %45 {strides = array<i32>} : memref<8x32xf32, #tpu.memory_space<vmem>>, vector<8x32xf32>,
    %c0_i32_40 = arith.constant 0 : i32
    %47 = arith.cmpi eq, %arg1, %c0_i32_40 : i32
    %48 = arith.extui %47 : i1 to i32
    %c0_i32_41 = arith.constant 0 : i32
    %49 = arith.cmpi ne, %48, %c0_i32_41 : i32
    scf.if %49 {
      %c0_42 = arith.constant 0 : index
      %c0_43 = arith.constant 0 : index
      %50 = vector.load %arg8[%c0_42, %c0_43] : memref<8x32xf32, #tpu.memory_space<vmem>>, vector<8x32xf32>
      %c0_44 = arith.constant 0 : index
      %c0_45 = arith.constant 0 : index
      %51 = vector.load %arg6[%c0_44, %c0_45] : memref<1x32xf32, #tpu.memory_space<vmem>>, vector<1x32xf32>
      %52 = vector.broadcast %51 : vector<1x32xf32> to vector<8x32xf32>
      %53 = arith.addf %50, %52 : vector<8x32xf32>
      %c0_46 = arith.constant 0 : index
      %c0_47 = arith.constant 0 : index
      %c0_48 = arith.constant 0 : index
      %54 = vector.load %arg7[%c0_46, %c0_47, %c0_48] : memref<1x8x32xf32, #tpu.memory_space<vmem>>, vector<1x8x32xf32>
      %55 = vector.shape_cast %54 : vector<1x8x32xf32> to vector<8x32xf32>
      %56 = vector.shape_cast %53 : vector<8x32xf32> to vector<1x8x32xf32>
      tpu.vector_store %arg7[%c0_46, %c0_47, %c0_48], %56 {strides = array<i32>} : memref<1x8x32xf32, #tpu.memory_space<vmem>>, vector<1x8x32xf32>,
    } else {
    }
    return
  }
  func.func @transform_0(%arg0: i32, %arg1: i32) -> (i32, i32, i32) {
    %c0_i32 = arith.constant 0 : i32
    %c0_i32_0 = arith.constant 0 : i32
    %c0_i32_1 = arith.constant 0 : i32
    return %arg0, %c0_i32, %c0_i32_0 : i32, i32, i32
  }
  func.func @transform_1(%arg0: i32, %arg1: i32) -> (i32, i32, i32, i32) {
    %c0_i32 = arith.constant 0 : i32
    %c0_i32_0 = arith.constant 0 : i32
    %c0_i32_1 = arith.constant 0 : i32
    %c0_i32_2 = arith.constant 0 : i32
    return %c0_i32, %arg1, %c0_i32_0, %c0_i32_1 : i32, i32, i32, i32
  }
  func.func @transform_2(%arg0: i32, %arg1: i32) -> (i32, i32, i32, i32) {
    %c0_i32 = arith.constant 0 : i32
    %c0_i32_0 = arith.constant 0 : i32
    %c0_i32_1 = arith.constant 0 : i32
    %c0_i32_2 = arith.constant 0 : i32
    return %c0_i32, %arg1, %c0_i32_0, %c0_i32_1 : i32, i32, i32, i32
  }
  func.func @transform_3(%arg0: i32, %arg1: i32) -> (i32, i32, i32) {
    %c0_i32 = arith.constant 0 : i32
    %c0_i32_0 = arith.constant 0 : i32
    %c0_i32_1 = arith.constant 0 : i32
    return %arg1, %c0_i32, %c0_i32_0 : i32, i32, i32
  }
  func.func @transform_4(%arg0: i32, %arg1: i32) -> (i32, i32) {
    %c0_i32 = arith.constant 0 : i32
    %c0_i32_0 = arith.constant 0 : i32
    %c0_i32_1 = arith.constant 0 : i32
    return %c0_i32, %c0_i32_0 : i32, i32
  }
  func.func @transform_5(%arg0: i32, %arg1: i32) -> (i32, i32, i32) {
    %c0_i32 = arith.constant 0 : i32
    %c0_i32_0 = arith.constant 0 : i32
    %c0_i32_1 = arith.constant 0 : i32
    return %arg0, %c0_i32, %c0_i32_0 : i32, i32, i32
  }
}

</mosaic_0001>

<bundles_post_ra>
// kernel: tpu_custom_call.1
= control target key start
LH: loop header
LB: loop body
LE: loop exit
PB: predicated region body
PF: predicated region fallthrough
CT: control target
= control target key end

     0   :  { %10 = vsyncpa [#allocation4], 0  ;;  %s3451_s0 = inlined_call_operand.vmem [shape: f32[2,8,32], index: 0, kind: input, shape index: {}]   ;;  %s3452_s1 = inlined_call_operand.vmem [shape: f32[3,4,32,8], index: 1, kind: input, shape index: {}]   ;;  %s3453_s2 = inlined_call_operand.vmem [shape: f32[3,4,1,8], index: 2, kind: input, shape index: {}]   ;;  %s3454_s3 = inlined_call_operand.vmem [shape: f32[4,8,32], index: 3, kind: input, shape index: {}]   ;;  %s3455_s4 = inlined_call_operand.vmem [shape: f32[1,32], index: 4, kind: input, shape index: {}]   ;;  %s3456_s5 = inlined_call_operand.hbm [shape: f32[2,8,32], index: 5, kind: output, shape index: {}]  }
   0x1   :  { %12 = vsyncpa [#allocation4 + $0x1], 0  ;;  %s2999_s18 = smov 0   ;;  %s3001_s19 = smov 0  }
   0x2   :  { %s3003_s20 = smov 0   ;;  %s3005_s21 = smov 0  }
   0x3   :  { %s3007_s22 = smov 0   ;;  %s3009_s23 = smov 0  }
   0x4 LB: > { %s2368_s24 = sadd.s32 4294967295, %s2963_s23   ;;  %s2369_s25 = sadd.s32 4294967294, %s2963_s23   ;;  %s2963_s23 = sphi %s3009_s23, %s18_s23   ;;  %s2959_s22 = sphi %s3007_s22, %s3463_s22   ;;  %s2955_s21 = sphi %s3005_s21, %s3462_s21   ;;  %s2951_s20 = sphi %s3003_s20, %s3461_s20   ;;  %s2947_s19 = sphi %s3001_s19, %s3460_s19   ;;  %s2943_s18 = sphi %s2999_s18, %s3459_s18  }
   0x5   : > { %s30_s26 = sadd.s32 1, %s2959_s22  ;;  %s162_s27 = sadd.s32 1, %s2951_s20 }
   0x6   : > { %p32_p0 = scmp.ge.s32.totalorder %s30_s26, 2  ;;  %p172_p1 = scmp.ne.s32.totalorder %s2951_s20, %s2947_s19 }
   0x7   : > { %p173_p2 = scmp.eq.s32.totalorder %s2368_s24, 1  ;;  %p178_p3 = scmp.ne.s32.totalorder %s2947_s19, %s2943_s18 }
   0x8   : > { %s3465_s26 = smov (%p32_p0, %s30_s26), 0  ;;  %p179_p5 = scmp.eq.s32.totalorder %s2369_s25, 1 }
   0x9   : > { %p3039_p4 = por %p173_p2, %p172_p1  ;;  %s159_s29 = ssub.s32 %s2959_s22, %s3465_s26 }
   0xa   : > { %p2375_p6 = scmp.ge.s32.totalorder %s2963_s23, 1  ;;  %p160_p7 = scmp.eq.s32.totalorder %s159_s29, 0 }
   0xb   : > { %p3046_p8 = por %p179_p5, %p178_p3  ;;  %p234_p9 = scmp.lt.s32.totalorder %s2963_s23, 3 }
   0xc   : > { %s3052_s6 = scalar_select %p160_p7, %s2951_s20, %s162_s27  }
   0xd   : > { %p235_p10 = pnand %p2375_p6, %p234_p9 }
   0xe   : > { %v305_v0 = vld [vmem:[%s3452_s1] sm:$0xff] (!%p235_p10)  ;;  %v306_v1 = vld [vmem:[%s3452_s1 + $0x8] sm:$0xff] (!%p235_p10)  ;;  %v2965_v3 = vmov (!%p235_p10), 0.0|0.0   ;;  %v307_v6 = vld [vmem:[%s3452_s1 + $0x10] sm:$0xff] (!%p235_p10)  ;;  %p276_p11 = scmp.lt.s32.totalorder (!%p235_p10), %s2955_s21, 1  ;;  %vm302_vm0 = vcmask (!%p235_p10), 261120  }
   0xf   : > { %238 = sbr.rel (%p235_p10) target bundleno = 1251 (0x4e3), region = 40  ;;  %v309_v2 = vld [vmem:[%s3452_s1 + $0x20] sm:$0xff] (!%p235_p10)  ;;  %2739 = vmatprep.subr.bf16.mxu0 (!%p235_p10), %v2965_v3  ;;  %2745 = vmatprep.subr.bf16.mxu1 (!%p235_p10), %v2965_v3  ;;  %v2740_v4 = vpack.c.bf16 (!%p235_p10), %v306_v1, %v305_v0  ;;  %v310_v5 = vld [vmem:[%s3452_s1 + $0x28] sm:$0xff] (!%p235_p10)  ;;  %v308_v7 = vld [vmem:[%s3452_s1 + $0x18] sm:$0xff] (!%p235_p10)  ;;  %vm2966_vm1 = vmmov (!%p235_p10), 0   ;;  %v2967_v11 = vmov (!%p235_p10), 0.0  }
  0x10   : > { %v2746_v8 = vpack.c.bf16 (!%p235_p10), %v310_v5, %v309_v2  ;;  %v311_v9 = vld [vmem:[%s3452_s1 + $0x30] sm:$0xff] (!%p235_p10)  ;;  %v312_v10 = vld [vmem:[%s3452_s1 + $0x38] sm:$0xff] (!%p235_p10)  ;;  %2555 = vmatprep.mubr.msk.f32.mxu0 (!%p235_p10), %vm2966_vm1, %v2967_v11  ;;  %303 = vst.msk [vmem:[#allocation2] sm:$0xff] (!%p235_p10), %vm302_vm0, %v2967_v11  ;;  %2566 = vmatprep.mubr.msk.f32.mxu1 (!%p235_p10), %vm2966_vm1, %v2967_v11  ;;  %v2743_v12 = vpack.c.bf16 (!%p235_p10), %v308_v7, %v307_v6  ;;  %v313_v14 = vld [vmem:[%s3452_s1 + $0x40] sm:$0xff] (!%p235_p10)  ;;  %vm1285_vm2 = vcmask (!%p235_p10), 64512   ;;  %s2460_s9 = sshll.u32 (!%p235_p10), %s2955_s21, 7 }
  0x11   : > { %2741 = vmatpush3.bf16.msra.mxu0 (!%p235_p10), %v2740_v4  ;;  %v2749_v13 = vpack.c.bf16 (!%p235_p10), %v312_v10, %v311_v9  ;;  %v314_v15 = vld [vmem:[%s3452_s1 + $0x48] sm:$0xff] (!%p235_p10)  ;;  %v317_v16 = vld [vmem:[%s3452_s1 + $0x60] sm:$0xff] (!%p235_p10)  ;;  %v315_v21 = vld [vmem:[%s3452_s1 + $0x50] sm:$0xff] (!%p235_p10)  ;;  %s3403_s14 = scalar_lea.hbm (!%p235_p10), %s3456_s5, %s2460_s9 }
  0x12   : > { %2747 = vmatpush3.bf16.msra.mxu1 (!%p235_p10), %v2746_v8  ;;  %2742 = vmatprep.subr.bf16.mxu0 (!%p235_p10), %v2965_v3  ;;  %v318_v17 = vld [vmem:[%s3452_s1 + $0x68] sm:$0xff] (!%p235_p10)  ;;  %v2752_v19 = vpack.c.bf16 (!%p235_p10), %v314_v15, %v313_v14  ;;  %v316_v22 = vld [vmem:[%s3452_s1 + $0x58] sm:$0xff] (!%p235_p10)  ;;  %v319_v23 = vld [vmem:[%s3452_s1 + $0x70] sm:$0xff] (!%p235_p10) }
  0x13   : > { %2748 = vmatprep.subr.bf16.mxu1 (!%p235_p10), %v2965_v3  ;;  %v2758_v20 = vpack.c.bf16 (!%p235_p10), %v318_v17, %v317_v16  ;;  %v320_v24 = vld [vmem:[%s3452_s1 + $0x78] sm:$0xff] (!%p235_p10)  ;;  %v2755_v25 = vpack.c.bf16 (!%p235_p10), %v316_v22, %v315_v21  ;;  %v2386_v27 = vld [vmem:[%s3452_s1 + $0x80] sm:$0xff] (!%p235_p10)  ;;  %v2387_v28 = vld [vmem:[%s3452_s1 + $0x88] sm:$0xff] (!%p235_p10) }
  0x14   : > { %v2761_v26 = vpack.c.bf16 (!%p235_p10), %v320_v24, %v319_v23  ;;  %v2390_v29 = vld [vmem:[%s3452_s1 + $0xa0] sm:$0xff] (!%p235_p10)  ;;  %v2391_v30 = vld [vmem:[%s3452_s1 + $0xa8] sm:$0xff] (!%p235_p10)  ;;  %v2764_v31 = vpack.c.bf16 (!%p235_p10), %v2387_v28, %v2386_v27  ;;  %v2388_v33 = vld [vmem:[%s3452_s1 + $0x90] sm:$0xff] (!%p235_p10) }
  0x15   : > { %2744 = vmatpush3.bf16.msra.mxu0 (!%p235_p10), %v2743_v12  ;;  %v2770_v32 = vpack.c.bf16 (!%p235_p10), %v2391_v30, %v2390_v29  ;;  %v2389_v34 = vld [vmem:[%s3452_s1 + $0x98] sm:$0xff] (!%p235_p10)  ;;  %v2392_v35 = vld [vmem:[%s3452_s1 + $0xb0] sm:$0xff] (!%p235_p10)  ;;  %v2394_v39 = vld [vmem:[%s3452_s1 + $0xc0] sm:$0xff] (!%p235_p10) }
  0x16   : > { %s277_s8 = scalar_select %p276_p11, %s2955_s21, 1  ;;  %2750 = vmatpush3.bf16.msra.mxu1 %v2749_v13  ;;  %2751 = vmatprep.subr.bf16.mxu0 %v2965_v3  ;;  %v2393_v36 = vld [vmem:[%s3452_s1 + $0xb8] sm:$0xff]  ;;  %v2767_v37 = vpack.c.bf16 %v2389_v34, %v2388_v33  ;;  %v2395_v40 = vld [vmem:[%s3452_s1 + $0xc8] sm:$0xff]  ;;  %v2398_v41 = vld [vmem:[%s3452_s1 + $0xe0] sm:$0xff] }
  0x17   : > { %2757 = vmatprep.subr.bf16.mxu1 %v2965_v3  ;;  %v2773_v38 = vpack.c.bf16 %v2393_v36, %v2392_v35  ;;  %v2399_v42 = vld [vmem:[%s3452_s1 + $0xe8] sm:$0xff]  ;;  %v2776_v43 = vpack.c.bf16 %v2395_v40, %v2394_v39  ;;  %v2396_v45 = vld [vmem:[%s3452_s1 + $0xd0] sm:$0xff]  ;;  %v2397_v46 = vld [vmem:[%s3452_s1 + $0xd8] sm:$0xff]  ;;  %s2968_s21 = smov [#allocation3]  }
  0x18   : > { %s2377_s13 = sshll.u32 %s277_s8, 3  ;;  %v2782_v44 = vpack.c.bf16 %v2399_v42, %v2398_v41  ;;  %v2400_v47 = vld [vmem:[%s3452_s1 + $0xf0] sm:$0xff]  ;;  %v2401_v48 = vld [vmem:[%s3452_s1 + $0xf8] sm:$0xff]  ;;  %v2779_v49 = vpack.c.bf16 %v2397_v46, %v2396_v45  ;;  %v2414_v51 = vld [vmem:[%s3452_s1 + $0x100] sm:$0xff]  ;;  %s2889_s17 = sshll.u32 %s2968_s21, 4  ;;  %s2890_s17 = int_to_ptr.vmem [resolvable:$false] %s2889_s17 }
  0x19   : > { %s279_s27 = scalar_lea.vmem %s3451_s0, %s2377_s13  ;;  %v2785_v50 = vpack.c.bf16 %v2401_v48, %v2400_v47  ;;  %v2415_v52 = vld [vmem:[%s3452_s1 + $0x108] sm:$0xff]  ;;  %v2418_v53 = vld [vmem:[%s3452_s1 + $0x120] sm:$0xff]  ;;  %v2416_v57 = vld [vmem:[%s3452_s1 + $0x110] sm:$0xff]  ;;  %s2891_s24 = scalar_lea.vmem %s2890_s17, 256 }
  0x1a   : > { %v3105_v18 = vld [vmem:[%s279_s27] sm:$0xff]  ;;  %v2419_v54 = vld [vmem:[%s3452_s1 + $0x128] sm:$0xff]  ;;  %v2788_v55 = vpack.c.bf16 %v2415_v52, %v2414_v51  ;;  %v2417_v58 = vld [vmem:[%s3452_s1 + $0x118] sm:$0xff]  ;;  %s273_s27 = sand.u32 1, %s2947_s19  }
  0x1b   : > { %2556 = vmatmul.mubr.msk.f32.vlgmr.msra.gmra.mrb[0].mxu0 %vm302_vm0, %v3105_v18  ;;  %2567 = vmatmul.mubr.msk.f32.vlgmr.msra.gmra.mrb[0].mxu1 %vm302_vm0, %v3105_v18  ;;  %v2794_v56 = vpack.c.bf16 %v2419_v54, %v2418_v53  ;;  %v2420_v59 = vld [vmem:[%s3452_s1 + $0x130] sm:$0xff]  ;;  %v2791_v60 = vpack.c.bf16 %v2417_v58, %v2416_v57  ;;  %v2421_v61 = vld [vmem:[%s3452_s1 + $0x138] sm:$0xff]  ;;  %v2422_v63 = vld [vmem:[%s3452_s1 + $0x140] sm:$0xff]  ;;  %s2376_s29 = sshll.u32 %s273_s27, 3  ;;  %s2246_s15 = scalar_lea.sflag [#allocation4], %s273_s27 }
  0x1c   : > { %2753 = vmatpush3.bf16.msra.mxu0 %v2752_v19  ;;  %2759 = vmatpush3.bf16.msra.mxu1 %v2758_v20  ;;  %v2797_v62 = vpack.c.bf16 %v2421_v61, %v2420_v59  ;;  %v2423_v0 = vld [vmem:[%s3452_s1 + $0x148] sm:$0xff]  ;;  %v2426_v1 = vld [vmem:[%s3452_s1 + $0x160] sm:$0xff]  ;;  %v2424_v6 = vld [vmem:[%s3452_s1 + $0x150] sm:$0xff]  ;;  %s275_s10 = scalar_lea.vmem [#allocation3], %s2376_s29 }
  0x1d   : > { %2754 = vmatprep.subr.bf16.mxu0 %v2965_v3  ;;  %2760 = vmatprep.subr.bf16.mxu1 %v2965_v3  ;;  %v2800_v2 = vpack.c.bf16 %v2423_v0, %v2422_v63  ;;  %v2427_v4 = vld [vmem:[%s3452_s1 + $0x168] sm:$0xff]  ;;  %v2425_v7 = vld [vmem:[%s3452_s1 + $0x158] sm:$0xff]  ;;  %v2428_v8 = vld [vmem:[%s3452_s1 + $0x170] sm:$0xff]  ;;  %s2259_s11 = sshll.u32 %s275_s10, 4  ;;  %s3405_s11 = int_to_ptr.vmem [resolvable:$true] %s2259_s11 }
  0x1e   : > { %2577 = vmatprep.mubr.msk.f32.mxu0 %vm2966_vm1, %v2967_v11  ;;  %2588 = vmatprep.mubr.msk.f32.mxu1 %vm2966_vm1, %v2967_v11  ;;  %v2806_v5 = vpack.c.bf16 %v2427_v4, %v2426_v1  ;;  %v2803_v9 = vpack.c.bf16 %v2425_v7, %v2424_v6  ;;  %v2429_v10 = vld [vmem:[%s3452_s1 + $0x178] sm:$0xff]  ;;  %v2406_v21 = vld [vmem:[%s3453_s2 + $0x4] ss:$0 sm:$0xff]  ;;  %v2378_v23 = vld [vmem:[%s3453_s2] ss:$0 sm:$0xff]  ;;  %s2885_s16 = scalar_lea.vmem %s3405_s11, 128  ;;  %p2892_p1 = scmp.lt.s32.totalorder %s3405_s11, %s2890_s17 }
  0x1f   : > { %v2809_v12 = vpack.c.bf16 %v2429_v10, %v2428_v8  ;;  %v2379_v27 = vld [vmem:[%s3453_s2 + $0x1] ss:$0 sm:$0xff]  ;;  %v2409_v33 = vld [vmem:[%s3453_s2 + $0x7] ss:$0 sm:$0xff]  ;;  %v2380_v35 = vld [vmem:[%s3453_s2 + $0x2] ss:$0 sm:$0xff]  ;;  %p2886_p12 = scmp.ne.s32.totalorder %s3405_s11, %s2885_s16  ;;  %p2893_p2 = scmp.lt.s32.totalorder %s2891_s24, %s2885_s16 }
  0x20   : > { %2756 = vmatpush3.bf16.msra.mxu0 %v2755_v25  ;;  %2762 = vmatpush3.bf16.msra.mxu1 %v2761_v26  ;;  %v2381_v39 = vld [vmem:[%s3453_s2 + $0x3] ss:$0 sm:$0xff]  ;;  %v2435_v45 = vld [vmem:[%s3453_s2 + $0x9] ss:$0 sm:$0xff] }
  0x21   : > { %2763 = vmatprep.subr.bf16.mxu0 %v2965_v3  ;;  %2769 = vmatprep.subr.bf16.mxu1 %v2965_v3  ;;  %p2887_p13 = pnand %p2886_p12, %p3039_p4  ;;  %p2894_p3 = por %p2893_p2, %p2892_p1 }
  0x23   : > { %2578 = vmatmul.mubr.msk.f32.vlgmr.msra.gmra.mrb[2].mxu0 %vm302_vm0, %v3105_v18  ;;  %2589 = vmatmul.mubr.msk.f32.vlgmr.msra.gmra.mrb[2].mxu1 %vm302_vm0, %v3105_v18  ;;  %p2888_p0 = pneg %p2887_p13 }
  0x24   : > { %2765 = vmatpush3.bf16.msra.mxu0 %v2764_v31  ;;  %2771 = vmatpush3.bf16.msra.mxu1 %v2770_v32  ;;  %v2408_v32 = vld [vmem:[%s3453_s2 + $0x6] ss:$0 sm:$0xff] }
  0x25   : > { %2766 = vmatprep.subr.bf16.mxu0 %v2965_v3  ;;  %2772 = vmatprep.subr.bf16.mxu1 %v2965_v3  ;;  %p2895_p5 = pnand %p2894_p3, %p2888_p0 }
  0x26   : > { %2599 = vmatprep.mubr.msk.f32.mxu0 %vm2966_vm1, %v2967_v11  ;;  %2610 = vmatprep.mubr.msk.f32.mxu1 %vm2966_vm1, %v2967_v11 }
  0x28   : > { %2768 = vmatpush3.bf16.msra.mxu0 %v2767_v37  ;;  %2774 = vmatpush3.bf16.msra.mxu1 %v2773_v38 }
  0x29   : > { %2775 = vmatprep.subr.bf16.mxu0 %v2965_v3  ;;  %2781 = vmatprep.subr.bf16.mxu1 %v2965_v3 }
  0x2b   : > { %2600 = vmatmul.mubr.msk.f32.vlgmr.msra.gmra.mrb[4].mxu0 %vm302_vm0, %v3105_v18  ;;  %2611 = vmatmul.mubr.msk.f32.vlgmr.msra.gmra.mrb[4].mxu1 %vm302_vm0, %v3105_v18 }
  0x2c   : > { %2777 = vmatpush3.bf16.msra.mxu0 %v2776_v43  ;;  %2783 = vmatpush3.bf16.msra.mxu1 %v2782_v44  ;;  %v2434_v44 = vld [vmem:[%s3453_s2 + $0x8] ss:$0 sm:$0xff] }
  0x2d   : > { %2778 = vmatprep.subr.bf16.mxu0 %v2965_v3  ;;  %2784 = vmatprep.subr.bf16.mxu1 %v2965_v3 }
  0x2e   : > { %2621 = vmatprep.mubr.msk.f32.mxu0 %vm2966_vm1, %v2967_v11  ;;  %2632 = vmatprep.mubr.msk.f32.mxu1 %vm2966_vm1, %v2967_v11 }
  0x30   : > { %2780 = vmatpush3.bf16.msra.mxu0 %v2779_v49  ;;  %2786 = vmatpush3.bf16.msra.mxu1 %v2785_v50 }
  0x31   : > { %2787 = vmatprep.subr.bf16.mxu0 %v2965_v3  ;;  %2793 = vmatprep.subr.bf16.mxu1 %v2965_v3 }
  0x33   : > { %2622 = vmatmul.mubr.msk.f32.vlgmr.msra.gmra.mrb[6].mxu0 %vm302_vm0, %v3105_v18  ;;  %2633 = vmatmul.mubr.msk.f32.vlgmr.msra.gmra.mrb[6].mxu1 %vm302_vm0, %v3105_v18 }
  0x34   : > { %2789 = vmatpush3.bf16.msra.mxu0 %v2788_v55  ;;  %2795 = vmatpush3.bf16.msra.mxu1 %v2794_v56 }
  0x35   : > { %2790 = vmatprep.subr.bf16.mxu0 %v2965_v3  ;;  %2796 = vmatprep.subr.bf16.mxu1 %v2965_v3 }
  0x36   : > { %2643 = vmatprep.mubr.msk.f32.mxu0 %vm2966_vm1, %v2967_v11  ;;  %2654 = vmatprep.mubr.msk.f32.mxu1 %vm2966_vm1, %v2967_v11 }
  0x38   : > { %2792 = vmatpush3.bf16.msra.mxu0 %v2791_v60  ;;  %2798 = vmatpush3.bf16.msra.mxu1 %v2797_v62 }
  0x39   : > { %2799 = vmatprep.subr.bf16.mxu0 %v2965_v3  ;;  %2805 = vmatprep.subr.bf16.mxu1 %v2965_v3 }
  0x3b   : > { %2644 = vmatmul.mubr.msk.f32.vlgmr.msra.gmra.mrb[8].mxu0 %vm302_vm0, %v3105_v18  ;;  %2655 = vmatmul.mubr.msk.f32.vlgmr.msra.gmra.mrb[8].mxu1 %vm302_vm0, %v3105_v18 }
  0x3c   : > { %2801 = vmatpush3.bf16.msra.mxu0 %v2800_v2  ;;  %2807 = vmatpush3.bf16.msra.mxu1 %v2806_v5 }
  0x3d   : > { %2802 = vmatprep.subr.bf16.mxu0 %v2965_v3  ;;  %2808 = vmatprep.subr.bf16.mxu1 %v2965_v3 }
  0x3e   : > { %2665 = vmatprep.mubr.msk.f32.mxu0 %vm2966_vm1, %v2967_v11  ;;  %2676 = vmatprep.mubr.msk.f32.mxu1 %vm2966_vm1, %v2967_v11 }
  0x40   : > { %2804 = vmatpush3.bf16.msra.mxu0 %v2803_v9  ;;  %2810 = vmatpush3.bf16.msra.mxu1 %v2809_v12 }
  0x41   : > { %2679 = vmatprep.subr.mxu0 %v2967_v11  ;;  %2684 = vmatprep.subr.mxu1 %v2967_v11 }
  0x43   : > { %2666 = vmatmul.mubr.msk.f32.vlgmr.msra.gmra.mrb[10].mxu0 %vm302_vm0, %v3105_v18  ;;  %2677 = vmatmul.mubr.msk.f32.vlgmr.msra.gmra.mrb[10].mxu1 %vm302_vm0, %v3105_v18  ;;  %v2407_v18 = vld [vmem:[%s3453_s2 + $0x5] ss:$0 sm:$0xff] }
  0x44   : > { %2681 = vmatprep.mubr.msk.f32.mxu0 %vm2966_vm1, %v2967_v11  ;;  %2686 = vmatprep.mubr.msk.f32.mxu1 %vm2966_vm1, %v2967_v11 }
  0xee   : > { %v419_v3 = vpop.f32.mrb[0].mxu0  ;;  %v489_v14 = vpop.f32.mrb[0].mxu1 }
  0xef   : > { %v2557_v13 = vpop.f32.mrb[1].mxu0  ;;  %v2568_v15 = vpop.f32.mrb[1].mxu1  ;;  %v420_v30 = vadd.f32 %v2378_v23, %v419_v3  ;;  %v490_v31 = vadd.f32 %v2379_v27, %v489_v14 }
  0xf6   : > { %v559_v16 = vpop.f32.mrb[2].mxu0  ;;  %v629_v19 = vpop.f32.mrb[2].mxu1 }
  0xf7   : > { %v2579_v17 = vpop.f32.mrb[3].mxu0  ;;  %v2590_v20 = vpop.f32.mrb[3].mxu1  ;;  %v560_v42 = vadd.f32 %v2380_v35, %v559_v16  ;;  %v630_v43 = vadd.f32 %v2381_v39, %v629_v19 }
  0xfe   : > { %v745_v22 = vpop.f32.mrb[4].mxu0  ;;  %v815_v25 = vpop.f32.mrb[4].mxu1 }
  0xff   : > { %v746_v24 = vadd.f32 %v2406_v21, %v745_v22  ;;  %v2601_v26 = vpop.f32.mrb[5].mxu0  ;;  %v816_v28 = vadd.f32 %v2407_v18, %v815_v25  ;;  %v2612_v29 = vpop.f32.mrb[5].mxu1 }
 0x101   : > { %2680 = vmatpush3.xpose.msk.msra.mxu0 %vm1285_vm2, %v746_v24  ;;  %2685 = vmatpush3.xpose.msk.msra.mxu1 %vm1285_vm2, %v816_v28  ;;  %v2436_v28 = vld [vmem:[%s3453_s2 + $0xa] ss:$0 sm:$0xff] }
 0x102   : > { %2689 = vmatprep.subr.mxu0 %v2967_v11  ;;  %2694 = vmatprep.subr.mxu1 %v2967_v11 }
 0x104   : > { %2682 = vmatmul.mubr.msk.f32.vlgmr.msra.gmra.mrb[12].mxu0 %vm1285_vm2, %v420_v30  ;;  %2687 = vmatmul.mubr.msk.f32.vlgmr.msra.gmra.mrb[12].mxu1 %vm1285_vm2, %v490_v31 }
 0x105   : > { %2691 = vmatprep.mubr.msk.f32.mxu0 %vm2966_vm1, %v2967_v11  ;;  %2696 = vmatprep.mubr.msk.f32.mxu1 %vm2966_vm1, %v2967_v11 }
 0x106   : > { %v885_v34 = vpop.f32.mrb[6].mxu0  ;;  %v955_v37 = vpop.f32.mrb[6].mxu1 }
 0x107   : > { %v886_v36 = vadd.f32 %v2408_v32, %v885_v34  ;;  %v2623_v38 = vpop.f32.mrb[7].mxu0  ;;  %v956_v40 = vadd.f32 %v2409_v33, %v955_v37  ;;  %v2634_v41 = vpop.f32.mrb[7].mxu1  ;;  %v2437_v33 = vld [vmem:[%s3453_s2 + $0xb] ss:$0 sm:$0xff] }
 0x108   : > { %v1926_v41 = vld [vmem:[%s3454_s3] sm:$0xff] }
 0x109   : > { %2690 = vmatpush3.xpose.msk.msra.mxu0 %vm1285_vm2, %v886_v36  ;;  %2695 = vmatpush3.xpose.msk.msra.mxu1 %vm1285_vm2, %v956_v40 }
 0x10a   : > { %2699 = vmatprep.subr.mxu0 %v2967_v11  ;;  %2704 = vmatprep.subr.mxu1 %v2967_v11 }
 0x10c   : > { %2692 = vmatmul.mubr.msk.f32.vlgmr.msra.gmra.mrb[14].mxu0 %vm1285_vm2, %v560_v42  ;;  %2697 = vmatmul.mubr.msk.f32.vlgmr.msra.gmra.mrb[14].mxu1 %vm1285_vm2, %v630_v43  ;;  %v1927_v42 = vld [vmem:[%s3454_s3 + $0x8] sm:$0xff]  ;;  %v1928_v43 = vld [vmem:[%s3454_s3 + $0x10] sm:$0xff] }
 0x10d   : > { %2701 = vmatprep.mubr.msk.f32.mxu0 %vm2966_vm1, %v2967_v11  ;;  %2706 = vmatprep.mubr.msk.f32.mxu1 %vm2966_vm1, %v2967_v11 }
 0x10e   : > { %v1071_v46 = vpop.f32.mrb[8].mxu0  ;;  %v1141_v49 = vpop.f32.mrb[8].mxu1 }
 0x10f   : > { %v1072_v47 = vadd.f32 %v2434_v44, %v1071_v46  ;;  %v2645_v48 = vpop.f32.mrb[9].mxu0  ;;  %v1142_v50 = vadd.f32 %v2435_v45, %v1141_v49  ;;  %v2656_v51 = vpop.f32.mrb[9].mxu1  ;;  %v1929_v46 = vld [vmem:[%s3454_s3 + $0x18] sm:$0xff] }
 0x111   : > { %2700 = vmatpush3.msra.mxu0 %v1072_v47  ;;  %2705 = vmatpush3.msra.mxu1 %v1142_v50 }
 0x112   : > { %2709 = vmatprep.subr.mxu0 %v2967_v11  ;;  %2714 = vmatprep.subr.mxu1 %v2967_v11 }
 0x116   : > { %v1211_v52 = vpop.f32.mrb[10].mxu0  ;;  %v3337_v53 = vpop.f32.mrb[10].mxu1 }
 0x117   : > { %v2667_v54 = vpop.f32.mrb[11].mxu0  ;;  %v2678_v55 = vpop.f32.mrb[11].mxu1  ;;  %v1212_v32 = vadd.f32 %v2436_v28, %v1211_v52  ;;  %v1282_v36 = vadd.f32 %v2437_v33, %v3337_v53 }
 0x1d7   : > { %v1358_v56 = vpop.f32.mrb[12].mxu0  ;;  %v1434_v57 = vpop.f32.mrb[12].mxu1 }
 0x1d8   : > { %v2683_v58 = vpop.f32.mrb[13].mxu0  ;;  %v1590_v59 = vsel %vm1285_vm2, %v1358_v56, -inf  ;;  %v2688_v60 = vpop.f32.mrb[13].mxu1  ;;  %v1593_v61 = vsel %vm1285_vm2, %v1434_v57, -inf }
 0x1d9   : > { %1591 = vmax.xlane.f32.xlu0 %v1590_v59 }
 0x1dd   : > { %1594 = vmax.xlane.f32.xlu0 %v1593_v61 }
 0x1df   : > { %v1510_v62 = vpop.f32.mrb[14].mxu0  ;;  %v1586_v63 = vpop.f32.mrb[14].mxu1 }
 0x1e0   : > { %v2693_v0 = vpop.f32.mrb[15].mxu0  ;;  %v1596_v1 = vsel %vm1285_vm2, %v1510_v62, -inf  ;;  %v2698_v2 = vpop.f32.mrb[15].mxu1  ;;  %v1599_v4 = vsel %vm1285_vm2, %v1586_v63, -inf }
 0x1e1   : > { %1597 = vmax.xlane.f32.xlu1 %v1596_v1  ;;  %v2222_v0 = vld [vmem:[#allocation2] sm:$0xff] }
 0x1e5   : > { %1600 = vmax.xlane.f32.xlu1 %v1599_v4 }
 0x266   : > { %v1592_v5 = vpop.xlane.xlu0 %1591 }
 0x267   : > { %v1602_v6 = vsub.f32 %v1358_v56, %v1592_v5 }
 0x269   : > { %v1606_v7 = vmul.f32 1.442695, %v1602_v6  ;;  %v2458_v6 = vld [vmem:[%s3455_s4] ss:$0 sm:$0xff] }
 0x26a   : > { %v1595_v8 = vpop.xlane.xlu0 %1594 }
 0x26b   : > { %2869 = vpow2.f32 %v1606_v7  ;;  %v1603_v9 = vsub.f32 %v1434_v57, %v1595_v8 }
 0x26d   : > { %v1608_v10 = vmul.f32 1.442695, %v1603_v9 }
 0x26e   : > { %v1598_v12 = vpop.xlane.xlu1 %1597 }
 0x26f   : > { %2871 = vpow2.f32 %v1608_v10  ;;  %v1604_v3 = vsub.f32 %v1510_v62, %v1598_v12 }
 0x271   : > { %v1610_v13 = vmul.f32 1.442695, %v1604_v3 }
 0x272   : > { %v1601_v14 = vpop.xlane.xlu1 %1600 }
 0x273   : > { %2873 = vpow2.f32 %v1610_v13  ;;  %v1605_v15 = vsub.f32 %v1586_v63, %v1601_v14 }
 0x275   : > { %v2870_v16 = vpop.eup %2869  ;;  %v1612_v17 = vmul.f32 1.442695, %v1605_v15 }
 0x276   : > { %v1614_v19 = vsel %vm1285_vm2, %v2870_v16, 0.0 }
 0x277   : > { %2875 = vpow2.f32 %v1612_v17  ;;  %1615 = vadd.xlane.f32.xlu0 %v1614_v19 }
 0x279   : > { %v2872_v20 = vpop.eup %2871 }
 0x27a   : > { %v1617_v21 = vsel %vm1285_vm2, %v2872_v20, 0.0 }
 0x27b   : > { %1618 = vadd.xlane.f32.xlu1 %v1617_v21 }
 0x27d   : > { %v2874_v18 = vpop.eup %2873 }
 0x27e   : > { %v1620_v22 = vsel %vm1285_vm2, %v2874_v18, 0.0 }
 0x27f   : > { %1621 = vadd.xlane.f32.xlu0 %v1620_v22 }
 0x281   : > { %v2876_v23 = vpop.eup %2875 }
 0x282   : > { %v1623_v24 = vsel %vm1285_vm2, %v2876_v23, 0.0 }
 0x283   : > { %1624 = vadd.xlane.f32.xlu1 %v1623_v24 }
 0x304   : > { %v1616_v25 = vpop.xlane.xlu0 %1615 }
 0x305   : > { %2877 = vrcp.f32 %v1616_v25 }
 0x308   : > { %v1619_v26 = vpop.xlane.xlu1 %1618 }
 0x309   : > { %2879 = vrcp.f32 %v1619_v26 }
 0x30c   : > { %v1622_v27 = vpop.xlane.xlu0 %1621 }
 0x30d   : > { %2881 = vrcp.f32 %v1622_v27 }
 0x30f   : > { %v2878_v29 = vpop.eup %2877 }
 0x310   : > { %v1630_v30 = vmul.f32 %v2878_v29, %v2870_v16  ;;  %v1625_v31 = vpop.xlane.xlu1 %1624 }
 0x311   : > { %2883 = vrcp.f32 %v1625_v31 }
 0x312   : > { %2702 = vmatmul.mubr.msk.f32.vlgmr.msra.gmra.mrb[16].mxu0 %vm1285_vm2, %v1630_v30 }
 0x313   : > { %v2880_v34 = vpop.eup %2879  ;;  %2710 = vmatpush3.msra.mxu0 %v1212_v32  ;;  %2711 = vmatprep.mubr.msk.f32.mxu0 %vm2966_vm1, %v2967_v11 }
 0x314   : > { %v1631_v35 = vmul.f32 %v2880_v34, %v2872_v20  ;;  %2719 = vmatprep.subr.mxu0 %v2967_v11 }
 0x316   : > { %2707 = vmatmul.mubr.msk.f32.vlgmr.msra.gmra.mrb[16].mxu1 %vm1285_vm2, %v1631_v35 }
 0x317   : > { %v2882_v37 = vpop.eup %2881  ;;  %2715 = vmatpush3.msra.mxu1 %v1282_v36  ;;  %2716 = vmatprep.mubr.msk.f32.mxu1 %vm2966_vm1, %v2967_v11 }
 0x318   : > { %v1632_v38 = vmul.f32 %v2882_v37, %v2874_v18  ;;  %2724 = vmatprep.subr.mxu1 %v2967_v11 }
 0x31a   : > { %2712 = vmatmul.mubr.msk.f32.vlgmr.msra.gmra.mrb[18].mxu0 %vm1285_vm2, %v1632_v38 }
 0x31b   : > { %v2884_v39 = vpop.eup %2883  ;;  %2721 = vmatprep.mubr.msk.f32.mxu0 %vm2966_vm1, %v2967_v11  ;;  %2720 = vmatpush3.msra.mxu0 %v1926_v41 }
 0x31c   : > { %v1633_v40 = vmul.f32 %v2884_v39, %v2876_v23  ;;  %2729 = vmatprep.subr.mxu0 %v2967_v11 }
 0x31e   : > { %2717 = vmatmul.mubr.msk.f32.vlgmr.msra.gmra.mrb[18].mxu1 %vm1285_vm2, %v1633_v40 }
 0x31f   : > { %2726 = vmatprep.mubr.msk.f32.mxu1 %vm2966_vm1, %v2967_v11  ;;  %2725 = vmatpush3.msra.mxu1 %v1927_v42 }
 0x320   : > { %2734 = vmatprep.subr.mxu1 %v2967_v11 }
 0x3e5   : > { %v1703_v44 = vpop.f32.mrb[16].mxu0 }
 0x3e6   : > { %v2703_v45 = vpop.f32.mrb[17].mxu0  ;;  %2722 = vmatmul.mubr.msk.f32.vlgmr.msra.gmra.mrb[20].mxu0 %vm1285_vm2, %v1703_v44 }
 0x3e7   : > { %2730 = vmatpush3.msra.mxu0 %v1928_v43  ;;  %2731 = vmatprep.mubr.msk.f32.mxu0 %vm2966_vm1, %v2967_v11 }
 0x3e9   : > { %v1776_v47 = vpop.f32.mrb[16].mxu1 }
 0x3ea   : > { %v2708_v48 = vpop.f32.mrb[17].mxu1  ;;  %2727 = vmatmul.mubr.msk.f32.vlgmr.msra.gmra.mrb[20].mxu1 %vm1285_vm2, %v1776_v47 }
 0x3eb   : > { %2735 = vmatpush3.msra.mxu1 %v1929_v46  ;;  %2736 = vmatprep.mubr.msk.f32.mxu1 %vm2966_vm1, %v2967_v11 }
 0x3ed   : > { %v1849_v49 = vpop.f32.mrb[18].mxu0 }
 0x3ee   : > { %v2713_v50 = vpop.f32.mrb[19].mxu0  ;;  %2732 = vmatmul.mubr.msk.f32.vlgmr.msra.gmra.mrb[22].mxu0 %vm1285_vm2, %v1849_v49 }
 0x3f1   : > { %v1922_v51 = vpop.f32.mrb[18].mxu1 }
 0x3f2   : > { %v2718_v52 = vpop.f32.mrb[19].mxu1  ;;  %2737 = vmatmul.mubr.msk.f32.vlgmr.msra.gmra.mrb[22].mxu1 %vm1285_vm2, %v1922_v51 }
 0x4b9   : > { %v1999_v53 = vpop.f32.mrb[20].mxu0 }
 0x4ba   : > { %v2723_v54 = vpop.f32.mrb[21].mxu0  ;;  %v2223_v56 = vsel %vm302_vm0, %v1999_v53, 0.0 }
 0x4bd   : > { %v2072_v55 = vpop.f32.mrb[20].mxu1 }
 0x4be   : > { %v2224_v57 = vsel %vm302_vm0, %v2072_v55, 0.0  ;;  %v2728_v58 = vpop.f32.mrb[21].mxu1 }
 0x4bf   : > { %v2225_v59 = vadd.f32 %v2224_v57, %v2223_v56 }
 0x4c1   : > { %v2145_v11 = vpop.f32.mrb[22].mxu0 }
 0x4c2   : > { %v2226_v60 = vsel %vm302_vm0, %v2145_v11, 0.0  ;;  %v2733_v61 = vpop.f32.mrb[23].mxu0 }
 0x4c3   : > { %v2227_v62 = vadd.f32 %v2226_v60, %v2225_v59 }
 0x4c5   : > { %v2218_v63 = vpop.f32.mrb[22].mxu1 }
 0x4c6   : > { %v2228_v1 = vsel %vm302_vm0, %v2218_v63, 0.0  ;;  %v2738_v2 = vpop.f32.mrb[23].mxu1 }
 0x4c7   : > { %v2229_v4 = vadd.f32 %v2228_v1, %v2227_v62 }
 0x4c9   : > { %v2230_v5 = vadd.f32 %v2229_v4, %v2222_v0 }
 0x4cb   : > { %2231 = vst.msk [vmem:[#allocation2] sm:$0xff] %vm302_vm0, %v2230_v5 }
 0x4d2   : > { %v2235_v7 = vld [vmem:[#allocation2] sm:$0xff] }
 0x4d3   : > { %v2243_v8 = vadd.f32 %v2458_v6, %v2235_v7 }
 0x4d5   : > { %2244 = vst.msk [vmem:[%s275_s10] sm:$0xff] %vm302_vm0, %v2243_v8 }
 0x4d6   : > { %2898 = shalt.err (!%p2895_p5)
}
 0x4d7   : > { %s2899_s25 = scalar_lea.hbm %s3403_s14, 128  ;;  %s2903_s7 = scalar_lea.hbm %s3456_s5, 256 }
 0x4d8   : > { %p2900_p6 = scmp.ne.s32.totalorder %s3403_s14, %s2899_s25  ;;  %p2904_p10 = scmp.lt.u32.totalorder %s3403_s14, %s3456_s5 }
 0x4d9   : > { %p2905_p11 = scmp.lt.u32.totalorder %s2903_s7, %s2899_s25  ;;  %p2907_p13 = scmp.lt.u32.totalorder %s2899_s25, %s3403_s14 }
 0x4da   : > { %p2901_p7 = pnand %p2900_p6, %p3039_p4 }
 0x4db   : > { %p2906_p12 = por %p2905_p11, %p2904_p10 }
 0x4dc   : > { %p2902_p9 = pneg %p2901_p7 }
 0x4dd   : > { %p2908_p0 = por %p2907_p13, %p2906_p12 }
 0x4df   : > { %p2909_p1 = pnand %p2908_p0, %p2902_p9 }
 0x4e1   : > { %2912 = shalt.err (!%p2909_p1)
}
 0x4e2   : > { %2811 = dma.vmem_to_hbm [thread:$0]  (%p3039_p4), %s3405_s11, 128, %s3403_s14, %s2246_s15  }
 0x4e3 PF: > { %p2817_p2 = scmp.ge.s32.totalorder %s2963_s23, 2  ;;  %s2271_s10 = sand.u32 1, %s2943_s18  }
 0x4e4   : > { %s2272_s12 = scalar_lea.sflag [#allocation4], %s2271_s10 }
 0x4e5   : > { %p2814_p3 = pnand %p2817_p2, %p3046_p8 }
 0x4e7   : > { %2938 = dma.done.wait (!%p2814_p3), %s2272_s12, 128  }
 0x4e8   : > { %2940 = vsyncadd (!%p2814_p3), %s2272_s12, 4294967168  ;;  %s18_s23 = sadd.s32 1, %s2963_s23   ;;  %s3459_s18 = smov %s2947_s19 }
 0x4e9   : > { %p15_p5 = scmp.ge.s32.totalorder %s18_s23, 4   ;;  %s3460_s19 = smov %s2951_s20 }
 0x4ea   : > { %s3461_s20 = smov %s3052_s6  ;;  %s3462_s21 = smov %s2959_s22 }
 0x4eb   : > { %s3463_s22 = smov %s3465_s26  ;;  %17 = sbr.rel (!%p15_p5) target bundleno = 4 (0x4), region = 96 }
 0x4f2   :  { %2277 = vsyncpa [#allocation4], 1 }
 0x4f3   :  { %2279 = vsyncpa [#allocation4 + $0x1], 1 }

</bundles_post_ra>
